<compile_context>
chip_gen: v6e
topology: v6e:2x2x1
jax: 0.10.0
libtpu: 0.0.40
codegen_flags: <defaults>
</compile_context>

<pallas_src>
import jax
import jax.numpy as jnp
from jax.experimental import pallas as pl
from jax.experimental.pallas import tpu as pltpu

_LANE = 128


def _detection_partials_kernel(yt_ref, yp_ref, gt_ref, gp_ref, m_ref,
                               out_ref,
                               acc_inter, acc_yt, acc_yp, acc_geo):
    """Per-(batch, pixel-tile) body.

    Block shapes (batch dim squeezed):
      yt/yp/m : (R, 128)     dense cls / pred / mask tiles
      gt/gp   : (5, R, 128)  geo tiles, channel-major -> gt_ref[c] is dense
      out     : (4, 128)     per-batch lane partials, written on the last tile
    Scratch: four (R, 128) f32 accumulators, live across the tile axis.
    """
    t = pl.program_id(1)

    @pl.when(t == 0)
    def _init():
        acc_inter[...] = jnp.zeros_like(acc_inter)
        acc_yt[...] = jnp.zeros_like(acc_yt)
        acc_yp[...] = jnp.zeros_like(acc_yp)
        acc_geo[...] = jnp.zeros_like(acc_geo)

    f32 = jnp.float32
    yt = yt_ref[...].astype(f32)
    yp = yp_ref[...].astype(f32)
    m = m_ref[...].astype(f32)
    ytm = yt * m                         # reused: dice intersection + geo weight

    acc_inter[...] += ytm * yp           # sum(y_true * y_pred * mask)
    acc_yt[...] += ytm                   # sum(y_true * mask)
    acc_yp[...] += yp * m                # sum(y_pred * mask)

    d1_gt = gt_ref[0].astype(f32)
    d2_gt = gt_ref[1].astype(f32)
    d3_gt = gt_ref[2].astype(f32)
    d4_gt = gt_ref[3].astype(f32)
    th_gt = gt_ref[4].astype(f32)
    d1_p = gp_ref[0].astype(f32)
    d2_p = gp_ref[1].astype(f32)
    d3_p = gp_ref[2].astype(f32)
    d4_p = gp_ref[3].astype(f32)
    th_p = gp_ref[4].astype(f32)

    area_gt = (d1_gt + d3_gt) * (d2_gt + d4_gt)
    area_pred = (d1_p + d3_p) * (d2_p + d4_p)
    w_union = jnp.minimum(d2_gt, d2_p) + jnp.minimum(d4_gt, d4_p)
    h_union = jnp.minimum(d1_gt, d1_p) + jnp.minimum(d3_gt, d3_p)
    area_intersect = w_union * h_union
    area_union = area_gt + area_pred - area_intersect

    # exact divide (keeps bit-level parity with the reference; approx
    # reciprocal was dropped per the tolerance concern)
    l_aabb = -jnp.log((area_intersect + 1.0) / (area_union + 1.0))
    l_theta = 1.0 - jnp.cos(th_p - th_gt)
    l_g = l_aabb + 20.0 * l_theta

    acc_geo[...] += l_g * ytm            # sum(L_g * y_true * mask)

    @pl.when(t == pl.num_programs(1) - 1)
    def _finalize():
        out_ref[0:1, :] = jnp.sum(acc_inter[...], axis=0, keepdims=True)
        out_ref[1:2, :] = jnp.sum(acc_yt[...], axis=0, keepdims=True)
        out_ref[2:3, :] = jnp.sum(acc_yp[...], axis=0, keepdims=True)
        out_ref[3:4, :] = jnp.sum(acc_geo[...], axis=0, keepdims=True)


def _pick_rows_per_block(rows: int, max_rows: int = 256) -> int:
    """Largest tile height that divides `rows` and satisfies the (8,128)
    block constraint (multiple of 8, or equal to the full extent).
    Returns 0 if the caller must pad `rows` instead."""
    if rows <= max_rows:
        return rows                      # full extent -> constraint satisfied
    best = 0
    for r in range(8, max_rows + 1, 8):
        if rows % r == 0:
            best = r
    return best


def detection_loss_pallas(y_true_cls, y_pred_cls, y_true_geo, y_pred_geo,
                          training_mask):
    """Inputs are NCHW arrays; returns a scalar f32 loss (DetectionLoss.forward)."""
    B, _, H, W = y_true_cls.shape
    hw = H * W
    n_total = float(B * hw)              # global torch.mean denominator

    # ---- free (no-transpose) relayout into lane-dense pixel tiles ----------
    rows = -(-hw // _LANE)               # ceil(hw / 128)
    r_blk = _pick_rows_per_block(rows)
    if r_blk == 0:                       # no nice divisor: pad the row count
        r_blk = 64
        rows = -(-rows // r_blk) * r_blk
    hw_pad = rows * _LANE
    pad = hw_pad - hw

    def cls3d(x):                        # (B,1,H,W) -> (B, rows, 128)
        x = x.reshape(B, hw)
        if pad:
            x = jnp.pad(x, ((0, 0), (0, pad)))
        return x.reshape(B, rows, _LANE)

    def geo4d(x):                        # (B,5,H,W) -> (B, 5, rows, 128)
        x = x.reshape(B, 5, hw)
        if pad:
            x = jnp.pad(x, ((0, 0), (0, 0), (0, pad)))
        return x.reshape(B, 5, rows, _LANE)

    num_tiles = rows // r_blk
    cls_spec = pl.BlockSpec((None, r_blk, _LANE), lambda b, t: (b, t, 0))
    geo_spec = pl.BlockSpec((None, 5, r_blk, _LANE), lambda b, t: (b, 0, t, 0))

    partials = pl.pallas_call(
        _detection_partials_kernel,
        out_shape=jax.ShapeDtypeStruct((B, 4, _LANE), jnp.float32),
        grid=(B, num_tiles),
        in_specs=[cls_spec, cls_spec, geo_spec, geo_spec, cls_spec],
        out_specs=pl.BlockSpec((None, 4, _LANE), lambda b, t: (b, 0, 0)),
        scratch_shapes=[pltpu.VMEM((r_blk, _LANE), jnp.float32)] * 4,
        compiler_params=pltpu.CompilerParams(
            dimension_semantics=("parallel", "arbitrary")),
    )(cls3d(y_true_cls), cls3d(y_pred_cls), geo4d(y_true_geo),
      geo4d(y_pred_geo), cls3d(training_mask))

    # Tiny epilogue: combine per-batch lane partials (B*4*128 floats).
    sums = jnp.sum(partials, axis=(0, 2))        # (4,)
    eps = 1e-5
    cls_loss = (1.0 - 2.0 * sums[0] / (sums[1] + sums[2] + eps)) * 0.01
    geo_loss = sums[3] / n_total
    return geo_loss + cls_loss


def fots_loss(y_true_cls, y_pred_cls, y_true_geo, y_pred_geo,
              y_true_recog, y_pred_recog, training_mask, mode="detection"):
    """Mirrors FOTSLoss.forward; returns (detection_loss, recognition_loss)."""
    recognition_loss = jnp.zeros((1,), jnp.float32)
    detection_loss = jnp.zeros((1,), jnp.float32)[0]

    if mode in ("detection", "united"):
        detection_loss = detection_loss_pallas(
            y_true_cls, y_pred_cls, y_true_geo, y_pred_geo, training_mask)
    # TODO(synk): 'recognition' mode uses torch CTCLoss (dynamic-programming
    # alignment over variable-length targets) — no clean Pallas equivalent;
    # left as zero.
    return detection_loss, recognition_loss


def _reference_detection_loss(y_true_cls, y_pred_cls, y_true_geo, y_pred_geo,
                              training_mask):
    """Pure-JAX reference of DetectionLoss.forward for validation."""
    eps = 1e-5
    inter = jnp.sum(y_true_cls * y_pred_cls * training_mask)
    union = (jnp.sum(y_true_cls * training_mask)
             + jnp.sum(y_pred_cls * training_mask) + eps)
    cls_loss = (1.0 - 2.0 * inter / union) * 0.01

    d1_gt, d2_gt, d3_gt, d4_gt, th_gt = jnp.split(y_true_geo, 5, axis=1)
    d1_p, d2_p, d3_p, d4_p, th_p = jnp.split(y_pred_geo, 5, axis=1)
    area_gt = (d1_gt + d3_gt) * (d2_gt + d4_gt)
    area_p = (d1_p + d3_p) * (d2_p + d4_p)
    w_union = jnp.minimum(d2_gt, d2_p) + jnp.minimum(d4_gt, d4_p)
    h_union = jnp.minimum(d1_gt, d1_p) + jnp.minimum(d3_gt, d3_p)
    area_i = w_union * h_union
    area_u = area_gt + area_p - area_i
    l_aabb = -jnp.log((area_i + 1.0) / (area_u + 1.0))
    l_theta = 1.0 - jnp.cos(th_p - th_gt)
    l_g = l_aabb + 20.0 * l_theta
    return jnp.mean(l_g * y_true_cls * training_mask) + cls_loss


if __name__ == "__main__":
    B, H, W = 2, 16, 16
    key = jax.random.PRNGKey(0)
    k1, k2, k3, k4, k5, k6, k7 = jax.random.split(key, 7)

    y_true_cls = (jax.random.uniform(k1, (B, 1, H, W)) > 0.5).astype(jnp.float32)
    y_pred_cls = jax.random.uniform(k2, (B, 1, H, W), dtype=jnp.float32)
    # geo channels 0..3 are positive distances, channel 4 is an angle
    dists_gt = jax.random.uniform(k3, (B, 4, H, W), minval=0.5, maxval=8.0)
    theta_gt = jax.random.uniform(k4, (B, 1, H, W), minval=-0.5, maxval=0.5)
    dists_pr = jax.random.uniform(k5, (B, 4, H, W), minval=0.5, maxval=8.0)
    theta_pr = jax.random.uniform(k6, (B, 1, H, W), minval=-0.5, maxval=0.5)
    y_true_geo = jnp.concatenate([dists_gt, theta_gt], axis=1).astype(jnp.float32)
    y_pred_geo = jnp.concatenate([dists_pr, theta_pr], axis=1).astype(jnp.float32)
    training_mask = (jax.random.uniform(k7, (B, 1, H, W)) > 0.2).astype(jnp.float32)

    det_loss, rec_loss = fots_loss(
        y_true_cls, y_pred_cls, y_true_geo, y_pred_geo,
        y_true_recog=None, y_pred_recog=None,
        training_mask=training_mask, mode="detection")
    det_loss = jax.block_until_ready(det_loss)
    rec_loss = jax.block_until_ready(rec_loss)

    ref = _reference_detection_loss(y_true_cls, y_pred_cls, y_true_geo,
                                    y_pred_geo, training_mask)
    assert jnp.allclose(det_loss, ref, rtol=1e-4, atol=1e-5), (det_loss, ref)
    print("KERNEL_OK")
</pallas_src>

<mosaic_0001>
module attributes {stable_mosaic.version = 11 : i64} {
  func.func @_detection_partials_kernel(%arg0: i32, %arg1: i32, %arg2: memref<1x2x128xf32, #tpu.memory_space<vmem>>, %arg3: memref<1x2x128xf32, #tpu.memory_space<vmem>>, %arg4: memref<1x5x2x128xf32, #tpu.memory_space<vmem>>, %arg5: memref<1x5x2x128xf32, #tpu.memory_space<vmem>>, %arg6: memref<1x2x128xf32, #tpu.memory_space<vmem>>, %arg7: memref<1x4x128xf32, #tpu.memory_space<vmem>>, %arg8: memref<2x128xf32, #tpu.memory_space<vmem>>, %arg9: memref<2x128xf32, #tpu.memory_space<vmem>>, %arg10: memref<2x128xf32, #tpu.memory_space<vmem>>, %arg11: memref<2x128xf32, #tpu.memory_space<vmem>>) attributes {dimension_semantics = [#tpu.dimension_semantics<parallel>, #tpu.dimension_semantics<arbitrary>], iteration_bounds = array<i64: 2, 1>, scalar_prefetch = 0 : i64, scratch_operands = 4 : i64, tpu.core_type = #tpu.core_type<tc>, window_params = [{transform_indices = @transform_0, window_bounds = array<i64: 1, 2, 128>}, {transform_indices = @transform_1, window_bounds = array<i64: 1, 2, 128>}, {transform_indices = @transform_2, window_bounds = array<i64: 1, 5, 2, 128>}, {transform_indices = @transform_3, window_bounds = array<i64: 1, 5, 2, 128>}, {transform_indices = @transform_4, window_bounds = array<i64: 1, 2, 128>}, {transform_indices = @transform_5, window_bounds = array<i64: 1, 4, 128>}]} {
    %c0_i32 = arith.constant 0 : i32
    %0 = arith.cmpi eq, %arg1, %c0_i32 : i32
    %1 = arith.extui %0 : i1 to i32
    %c0_i32_0 = arith.constant 0 : i32
    %2 = arith.cmpi ne, %1, %c0_i32_0 : i32
    scf.if %2 {
      %cst_67 = arith.constant 0.000000e+00 : f32
      %78 = vector.broadcast %cst_67 : f32 to vector<2x128xf32>
      %c0_68 = arith.constant 0 : index
      %c0_69 = arith.constant 0 : index
      %79 = vector.load %arg8[%c0_68, %c0_69] : memref<2x128xf32, #tpu.memory_space<vmem>>, vector<2x128xf32>
      tpu.vector_store %arg8[%c0_68, %c0_69], %78 {strides = array<i32>} : memref<2x128xf32, #tpu.memory_space<vmem>>, vector<2x128xf32>,
      %cst_70 = arith.constant 0.000000e+00 : f32
      %80 = vector.broadcast %cst_70 : f32 to vector<2x128xf32>
      %c0_71 = arith.constant 0 : index
      %c0_72 = arith.constant 0 : index
      %81 = vector.load %arg9[%c0_71, %c0_72] : memref<2x128xf32, #tpu.memory_space<vmem>>, vector<2x128xf32>
      tpu.vector_store %arg9[%c0_71, %c0_72], %80 {strides = array<i32>} : memref<2x128xf32, #tpu.memory_space<vmem>>, vector<2x128xf32>,
      %cst_73 = arith.constant 0.000000e+00 : f32
      %82 = vector.broadcast %cst_73 : f32 to vector<2x128xf32>
      %c0_74 = arith.constant 0 : index
      %c0_75 = arith.constant 0 : index
      %83 = vector.load %arg10[%c0_74, %c0_75] : memref<2x128xf32, #tpu.memory_space<vmem>>, vector<2x128xf32>
      tpu.vector_store %arg10[%c0_74, %c0_75], %82 {strides = array<i32>} : memref<2x128xf32, #tpu.memory_space<vmem>>, vector<2x128xf32>,
      %cst_76 = arith.constant 0.000000e+00 : f32
      %84 = vector.broadcast %cst_76 : f32 to vector<2x128xf32>
      %c0_77 = arith.constant 0 : index
      %c0_78 = arith.constant 0 : index
      %85 = vector.load %arg11[%c0_77, %c0_78] : memref<2x128xf32, #tpu.memory_space<vmem>>, vector<2x128xf32>
      tpu.vector_store %arg11[%c0_77, %c0_78], %84 {strides = array<i32>} : memref<2x128xf32, #tpu.memory_space<vmem>>, vector<2x128xf32>,
    } else {
    }
    %c0 = arith.constant 0 : index
    %c0_1 = arith.constant 0 : index
    %c0_2 = arith.constant 0 : index
    %3 = vector.load %arg2[%c0, %c0_1, %c0_2] : memref<1x2x128xf32, #tpu.memory_space<vmem>>, vector<1x2x128xf32>
    %4 = vector.shape_cast %3 : vector<1x2x128xf32> to vector<2x128xf32>
    %c0_3 = arith.constant 0 : index
    %c0_4 = arith.constant 0 : index
    %c0_5 = arith.constant 0 : index
    %5 = vector.load %arg3[%c0_3, %c0_4, %c0_5] : memref<1x2x128xf32, #tpu.memory_space<vmem>>, vector<1x2x128xf32>
    %6 = vector.shape_cast %5 : vector<1x2x128xf32> to vector<2x128xf32>
    %c0_6 = arith.constant 0 : index
    %c0_7 = arith.constant 0 : index
    %c0_8 = arith.constant 0 : index
    %7 = vector.load %arg6[%c0_6, %c0_7, %c0_8] : memref<1x2x128xf32, #tpu.memory_space<vmem>>, vector<1x2x128xf32>
    %8 = vector.shape_cast %7 : vector<1x2x128xf32> to vector<2x128xf32>
    %9 = arith.mulf %4, %8 : vector<2x128xf32>
    %c0_9 = arith.constant 0 : index
    %c0_10 = arith.constant 0 : index
    %10 = vector.load %arg8[%c0_9, %c0_10] : memref<2x128xf32, #tpu.memory_space<vmem>>, vector<2x128xf32>
    %11 = arith.mulf %9, %6 : vector<2x128xf32>
    %12 = arith.addf %10, %11 : vector<2x128xf32>
    %c0_11 = arith.constant 0 : index
    %c0_12 = arith.constant 0 : index
    %13 = vector.load %arg8[%c0_11, %c0_12] : memref<2x128xf32, #tpu.memory_space<vmem>>, vector<2x128xf32>
    tpu.vector_store %arg8[%c0_11, %c0_12], %12 {strides = array<i32>} : memref<2x128xf32, #tpu.memory_space<vmem>>, vector<2x128xf32>,
    %c0_13 = arith.constant 0 : index
    %c0_14 = arith.constant 0 : index
    %14 = vector.load %arg9[%c0_13, %c0_14] : memref<2x128xf32, #tpu.memory_space<vmem>>, vector<2x128xf32>
    %15 = arith.addf %14, %9 : vector<2x128xf32>
    %c0_15 = arith.constant 0 : index
    %c0_16 = arith.constant 0 : index
    %16 = vector.load %arg9[%c0_15, %c0_16] : memref<2x128xf32, #tpu.memory_space<vmem>>, vector<2x128xf32>
    tpu.vector_store %arg9[%c0_15, %c0_16], %15 {strides = array<i32>} : memref<2x128xf32, #tpu.memory_space<vmem>>, vector<2x128xf32>,
    %c0_17 = arith.constant 0 : index
    %c0_18 = arith.constant 0 : index
    %17 = vector.load %arg10[%c0_17, %c0_18] : memref<2x128xf32, #tpu.memory_space<vmem>>, vector<2x128xf32>
    %18 = arith.mulf %6, %8 : vector<2x128xf32>
    %19 = arith.addf %17, %18 : vector<2x128xf32>
    %c0_19 = arith.constant 0 : index
    %c0_20 = arith.constant 0 : index
    %20 = vector.load %arg10[%c0_19, %c0_20] : memref<2x128xf32, #tpu.memory_space<vmem>>, vector<2x128xf32>
    tpu.vector_store %arg10[%c0_19, %c0_20], %19 {strides = array<i32>} : memref<2x128xf32, #tpu.memory_space<vmem>>, vector<2x128xf32>,
    %c0_21 = arith.constant 0 : index
    %c0_22 = arith.constant 0 : index
    %c0_23 = arith.constant 0 : index
    %c0_24 = arith.constant 0 : index
    %21 = vector.load %arg4[%c0_21, %c0_22, %c0_23, %c0_24] : memref<1x5x2x128xf32, #tpu.memory_space<vmem>>, vector<1x1x2x128xf32>
    %22 = vector.shape_cast %21 : vector<1x1x2x128xf32> to vector<2x128xf32>
    %c0_25 = arith.constant 0 : index
    %c1 = arith.constant 1 : index
    %c0_26 = arith.constant 0 : index
    %c0_27 = arith.constant 0 : index
    %23 = vector.load %arg4[%c0_25, %c1, %c0_26, %c0_27] : memref<1x5x2x128xf32, #tpu.memory_space<vmem>>, vector<1x1x2x128xf32>
    %24 = vector.shape_cast %23 : vector<1x1x2x128xf32> to vector<2x128xf32>
    %c0_28 = arith.constant 0 : index
    %c2 = arith.constant 2 : index
    %c0_29 = arith.constant 0 : index
    %c0_30 = arith.constant 0 : index
    %25 = vector.load %arg4[%c0_28, %c2, %c0_29, %c0_30] : memref<1x5x2x128xf32, #tpu.memory_space<vmem>>, vector<1x1x2x128xf32>
    %26 = vector.shape_cast %25 : vector<1x1x2x128xf32> to vector<2x128xf32>
    %c0_31 = arith.constant 0 : index
    %c3 = arith.constant 3 : index
    %c0_32 = arith.constant 0 : index
    %c0_33 = arith.constant 0 : index
    %27 = vector.load %arg4[%c0_31, %c3, %c0_32, %c0_33] : memref<1x5x2x128xf32, #tpu.memory_space<vmem>>, vector<1x1x2x128xf32>
    %28 = vector.shape_cast %27 : vector<1x1x2x128xf32> to vector<2x128xf32>
    %c0_34 = arith.constant 0 : index
    %c4 = arith.constant 4 : index
    %c0_35 = arith.constant 0 : index
    %c0_36 = arith.constant 0 : index
    %29 = vector.load %arg4[%c0_34, %c4, %c0_35, %c0_36] : memref<1x5x2x128xf32, #tpu.memory_space<vmem>>, vector<1x1x2x128xf32>
    %30 = vector.shape_cast %29 : vector<1x1x2x128xf32> to vector<2x128xf32>
    %c0_37 = arith.constant 0 : index
    %c0_38 = arith.constant 0 : index
    %c0_39 = arith.constant 0 : index
    %c0_40 = arith.constant 0 : index
    %31 = vector.load %arg5[%c0_37, %c0_38, %c0_39, %c0_40] : memref<1x5x2x128xf32, #tpu.memory_space<vmem>>, vector<1x1x2x128xf32>
    %32 = vector.shape_cast %31 : vector<1x1x2x128xf32> to vector<2x128xf32>
    %c0_41 = arith.constant 0 : index
    %c1_42 = arith.constant 1 : index
    %c0_43 = arith.constant 0 : index
    %c0_44 = arith.constant 0 : index
    %33 = vector.load %arg5[%c0_41, %c1_42, %c0_43, %c0_44] : memref<1x5x2x128xf32, #tpu.memory_space<vmem>>, vector<1x1x2x128xf32>
    %34 = vector.shape_cast %33 : vector<1x1x2x128xf32> to vector<2x128xf32>
    %c0_45 = arith.constant 0 : index
    %c2_46 = arith.constant 2 : index
    %c0_47 = arith.constant 0 : index
    %c0_48 = arith.constant 0 : index
    %35 = vector.load %arg5[%c0_45, %c2_46, %c0_47, %c0_48] : memref<1x5x2x128xf32, #tpu.memory_space<vmem>>, vector<1x1x2x128xf32>
    %36 = vector.shape_cast %35 : vector<1x1x2x128xf32> to vector<2x128xf32>
    %c0_49 = arith.constant 0 : index
    %c3_50 = arith.constant 3 : index
    %c0_51 = arith.constant 0 : index
    %c0_52 = arith.constant 0 : index
    %37 = vector.load %arg5[%c0_49, %c3_50, %c0_51, %c0_52] : memref<1x5x2x128xf32, #tpu.memory_space<vmem>>, vector<1x1x2x128xf32>
    %38 = vector.shape_cast %37 : vector<1x1x2x128xf32> to vector<2x128xf32>
    %c0_53 = arith.constant 0 : index
    %c4_54 = arith.constant 4 : index
    %c0_55 = arith.constant 0 : index
    %c0_56 = arith.constant 0 : index
    %39 = vector.load %arg5[%c0_53, %c4_54, %c0_55, %c0_56] : memref<1x5x2x128xf32, #tpu.memory_space<vmem>>, vector<1x1x2x128xf32>
    %40 = vector.shape_cast %39 : vector<1x1x2x128xf32> to vector<2x128xf32>
    %41 = arith.addf %22, %26 : vector<2x128xf32>
    %42 = arith.addf %24, %28 : vector<2x128xf32>
    %43 = arith.mulf %41, %42 : vector<2x128xf32>
    %44 = arith.addf %32, %36 : vector<2x128xf32>
    %45 = arith.addf %34, %38 : vector<2x128xf32>
    %46 = arith.mulf %44, %45 : vector<2x128xf32>
    %47 = arith.minimumf %24, %34 : vector<2x128xf32>
    %48 = arith.minimumf %28, %38 : vector<2x128xf32>
    %49 = arith.addf %47, %48 : vector<2x128xf32>
    %50 = arith.minimumf %22, %32 : vector<2x128xf32>
    %51 = arith.minimumf %26, %36 : vector<2x128xf32>
    %52 = arith.addf %50, %51 : vector<2x128xf32>
    %53 = arith.mulf %49, %52 : vector<2x128xf32>
    %54 = arith.addf %43, %46 : vector<2x128xf32>
    %55 = arith.subf %54, %53 : vector<2x128xf32>
    %cst = arith.constant 1.000000e+00 : f32
    %56 = vector.broadcast %cst : f32 to vector<2x128xf32>
    %57 = arith.addf %53, %56 : vector<2x128xf32>
    %cst_57 = arith.constant 1.000000e+00 : f32
    %58 = vector.broadcast %cst_57 : f32 to vector<2x128xf32>
    %59 = arith.addf %55, %58 : vector<2x128xf32>
    %60 = arith.divf %57, %59 : vector<2x128xf32>
    %61 = math.log %60 : vector<2x128xf32>
    %cst_58 = arith.constant 0.000000e+00 : f32
    %62 = vector.broadcast %cst_58 : f32 to vector<2x128xf32>
    %63 = arith.subf %62, %61 : vector<2x128xf32>
    %64 = arith.subf %40, %30 : vector<2x128xf32>
    %65 = math.cos %64 : vector<2x128xf32>
    %cst_59 = arith.constant 1.000000e+00 : f32
    %66 = vector.broadcast %cst_59 : f32 to vector<2x128xf32>
    %67 = arith.subf %66, %65 : vector<2x128xf32>
    %cst_60 = arith.constant 2.000000e+01 : f32
    %68 = vector.broadcast %cst_60 : f32 to vector<2x128xf32>
    %69 = arith.mulf %68, %67 : vector<2x128xf32>
    %70 = arith.addf %63, %69 : vector<2x128xf32>
    %c0_61 = arith.constant 0 : index
    %c0_62 = arith.constant 0 : index
    %71 = vector.load %arg11[%c0_61, %c0_62] : memref<2x128xf32, #tpu.memory_space<vmem>>, vector<2x128xf32>
    %72 = arith.mulf %70, %9 : vector<2x128xf32>
    %73 = arith.addf %71, %72 : vector<2x128xf32>
    %c0_63 = arith.constant 0 : index
    %c0_64 = arith.constant 0 : index
    %74 = vector.load %arg11[%c0_63, %c0_64] : memref<2x128xf32, #tpu.memory_space<vmem>>, vector<2x128xf32>
    tpu.vector_store %arg11[%c0_63, %c0_64], %73 {strides = array<i32>} : memref<2x128xf32, #tpu.memory_space<vmem>>, vector<2x128xf32>,
    %c0_i32_65 = arith.constant 0 : i32
    %75 = arith.cmpi eq, %arg1, %c0_i32_65 : i32
    %76 = arith.extui %75 : i1 to i32
    %c0_i32_66 = arith.constant 0 : i32
    %77 = arith.cmpi ne, %76, %c0_i32_66 : i32
    scf.if %77 {
      %c0_67 = arith.constant 0 : index
      %c0_68 = arith.constant 0 : index
      %78 = vector.load %arg8[%c0_67, %c0_68] : memref<2x128xf32, #tpu.memory_space<vmem>>, vector<2x128xf32>
      %cst_69 = arith.constant dense<0.000000e+00> : vector<128xf32>
      %79 = vector.multi_reduction <add>, %78, %cst_69 [0] : vector<2x128xf32> to vector<128xf32>
      %80 = vector.shape_cast %79 : vector<128xf32> to vector<1x128xf32>
      %c0_70 = arith.constant 0 : index
      %c0_71 = arith.constant 0 : index
      %c0_72 = arith.constant 0 : index
      %81 = vector.load %arg7[%c0_70, %c0_71, %c0_72] : memref<1x4x128xf32, #tpu.memory_space<vmem>>, vector<1x1x128xf32>
      %82 = vector.shape_cast %81 : vector<1x1x128xf32> to vector<1x128xf32>
      %83 = vector.shape_cast %80 : vector<1x128xf32> to vector<1x1x128xf32>
      tpu.vector_store %arg7[%c0_70, %c0_71, %c0_72], %83 {strides = array<i32>} : memref<1x4x128xf32, #tpu.memory_space<vmem>>, vector<1x1x128xf32>,
      %c0_73 = arith.constant 0 : index
      %c0_74 = arith.constant 0 : index
      %84 = vector.load %arg9[%c0_73, %c0_74] : memref<2x128xf32, #tpu.memory_space<vmem>>, vector<2x128xf32>
      %cst_75 = arith.constant dense<0.000000e+00> : vector<128xf32>
      %85 = vector.multi_reduction <add>, %84, %cst_75 [0] : vector<2x128xf32> to vector<128xf32>
      %86 = vector.shape_cast %85 : vector<128xf32> to vector<1x128xf32>
      %c0_76 = arith.constant 0 : index
      %c1_77 = arith.constant 1 : index
      %c0_78 = arith.constant 0 : index
      %87 = vector.load %arg7[%c0_76, %c1_77, %c0_78] : memref<1x4x128xf32, #tpu.memory_space<vmem>>, vector<1x1x128xf32>
      %88 = vector.shape_cast %87 : vector<1x1x128xf32> to vector<1x128xf32>
      %89 = vector.shape_cast %86 : vector<1x128xf32> to vector<1x1x128xf32>
      tpu.vector_store %arg7[%c0_76, %c1_77, %c0_78], %89 {strides = array<i32>} : memref<1x4x128xf32, #tpu.memory_space<vmem>>, vector<1x1x128xf32>,
      %c0_79 = arith.constant 0 : index
      %c0_80 = arith.constant 0 : index
      %90 = vector.load %arg10[%c0_79, %c0_80] : memref<2x128xf32, #tpu.memory_space<vmem>>, vector<2x128xf32>
      %cst_81 = arith.constant dense<0.000000e+00> : vector<128xf32>
      %91 = vector.multi_reduction <add>, %90, %cst_81 [0] : vector<2x128xf32> to vector<128xf32>
      %92 = vector.shape_cast %91 : vector<128xf32> to vector<1x128xf32>
      %c0_82 = arith.constant 0 : index
      %c2_83 = arith.constant 2 : index
      %c0_84 = arith.constant 0 : index
      %93 = vector.load %arg7[%c0_82, %c2_83, %c0_84] : memref<1x4x128xf32, #tpu.memory_space<vmem>>, vector<1x1x128xf32>
      %94 = vector.shape_cast %93 : vector<1x1x128xf32> to vector<1x128xf32>
      %95 = vector.shape_cast %92 : vector<1x128xf32> to vector<1x1x128xf32>
      tpu.vector_store %arg7[%c0_82, %c2_83, %c0_84], %95 {strides = array<i32>} : memref<1x4x128xf32, #tpu.memory_space<vmem>>, vector<1x1x128xf32>,
      %c0_85 = arith.constant 0 : index
      %c0_86 = arith.constant 0 : index
      %96 = vector.load %arg11[%c0_85, %c0_86] : memref<2x128xf32, #tpu.memory_space<vmem>>, vector<2x128xf32>
      %cst_87 = arith.constant dense<0.000000e+00> : vector<128xf32>
      %97 = vector.multi_reduction <add>, %96, %cst_87 [0] : vector<2x128xf32> to vector<128xf32>
      %98 = vector.shape_cast %97 : vector<128xf32> to vector<1x128xf32>
      %c0_88 = arith.constant 0 : index
      %c3_89 = arith.constant 3 : index
      %c0_90 = arith.constant 0 : index
      %99 = vector.load %arg7[%c0_88, %c3_89, %c0_90] : memref<1x4x128xf32, #tpu.memory_space<vmem>>, vector<1x1x128xf32>
      %100 = vector.shape_cast %99 : vector<1x1x128xf32> to vector<1x128xf32>
      %101 = vector.shape_cast %98 : vector<1x128xf32> to vector<1x1x128xf32>
      tpu.vector_store %arg7[%c0_88, %c3_89, %c0_90], %101 {strides = array<i32>} : memref<1x4x128xf32, #tpu.memory_space<vmem>>, vector<1x1x128xf32>,
    } else {
    }
    return
  }
  func.func @transform_0(%arg0: i32, %arg1: i32) -> (i32, i32, i32) {
    %c0_i32 = arith.constant 0 : i32
    %c0_i32_0 = arith.constant 0 : i32
    return %arg0, %arg1, %c0_i32 : i32, i32, i32
  }
  func.func @transform_1(%arg0: i32, %arg1: i32) -> (i32, i32, i32) {
    %c0_i32 = arith.constant 0 : i32
    %c0_i32_0 = arith.constant 0 : i32
    return %arg0, %arg1, %c0_i32 : i32, i32, i32
  }
  func.func @transform_2(%arg0: i32, %arg1: i32) -> (i32, i32, i32, i32) {
    %c0_i32 = arith.constant 0 : i32
    %c0_i32_0 = arith.constant 0 : i32
    %c0_i32_1 = arith.constant 0 : i32
    return %arg0, %c0_i32, %arg1, %c0_i32_0 : i32, i32, i32, i32
  }
  func.func @transform_3(%arg0: i32, %arg1: i32) -> (i32, i32, i32, i32) {
    %c0_i32 = arith.constant 0 : i32
    %c0_i32_0 = arith.constant 0 : i32
    %c0_i32_1 = arith.constant 0 : i32
    return %arg0, %c0_i32, %arg1, %c0_i32_0 : i32, i32, i32, i32
  }
  func.func @transform_4(%arg0: i32, %arg1: i32) -> (i32, i32, i32) {
    %c0_i32 = arith.constant 0 : i32
    %c0_i32_0 = arith.constant 0 : i32
    return %arg0, %arg1, %c0_i32 : i32, i32, i32
  }
  func.func @transform_5(%arg0: i32, %arg1: i32) -> (i32, i32, i32) {
    %c0_i32 = arith.constant 0 : i32
    %c0_i32_0 = arith.constant 0 : i32
    %c0_i32_1 = arith.constant 0 : i32
    return %arg0, %c0_i32, %c0_i32_0 : i32, i32, i32
  }
}

</mosaic_0001>

<bundles_post_ra>
// kernel: tpu_custom_call.1
= control target key start
LH: loop header
LB: loop body
LE: loop exit
PB: predicated region body
PF: predicated region fallthrough
CT: control target
= control target key end

     0   :  { %s1470_s0 = inlined_call_operand.hbm [shape: f32[2,2,128], index: 0, kind: input, shape index: {}]   ;;  %s1471_s1 = inlined_call_operand.hbm [shape: f32[2,2,128], index: 1, kind: input, shape index: {}]   ;;  %s1472_s2 = inlined_call_operand.hbm [shape: f32[2,5,2,128], index: 2, kind: input, shape index: {}]   ;;  %s1473_s3 = inlined_call_operand.hbm [shape: f32[2,5,2,128], index: 3, kind: input, shape index: {}]   ;;  %s1474_s4 = inlined_call_operand.vmem [shape: f32[2,2,128], index: 4, kind: input, shape index: {}]   ;;  %s1475_s5 = inlined_call_operand.hbm [shape: f32[2,4,128], index: 5, kind: output, shape index: {}]  }
   0x1   :  { %1480 = sst [smem:[#allocation23_spill]] %s1470_s0 }
   0x2   :  { %1481 = sst [smem:[#allocation24_spill]] %s1471_s1 }
   0x3   :  { %10 = vsyncpa [#allocation7], 0 }
   0x4   :  { %12 = vsyncpa [#allocation7 + $0x1], 0 }
   0x5   :  { %13 = vsyncpa [#allocation10], 0 }
   0x6   :  { %15 = vsyncpa [#allocation10 + $0x1], 0 }
   0x7   :  { %16 = vsyncpa [#allocation13], 0 }
   0x8   :  { %18 = vsyncpa [#allocation13 + $0x1], 0 }
   0x9   :  { %19 = vsyncpa [#allocation8], 0 }
   0xa   :  { %21 = vsyncpa [#allocation8 + $0x1], 0  ;;  %s1179_s18 = smov 0   ;;  %s1181_s19 = smov 0  }
   0xb   :  { %s1183_s20 = smov 0   ;;  %s1185_s21 = smov 0  }
   0xc   :  { %s1187_s22 = smov 0   ;;  %s1189_s23 = smov 0  }
   0xd LB: > { %1482 = sst [smem:[#allocation19_spill]] %s1121_s20  ;;  %s1210_s24 = sadd.s32 4294967295, %s1133_s23   ;;  %s1133_s23 = sphi %s1189_s23, %s27_s23   ;;  %s1129_s22 = sphi %s1187_s22, %s1503_s22   ;;  %s1125_s21 = sphi %s1185_s21, %s1502_s21   ;;  %s1121_s20 = sphi %s1183_s20, %s1498_s20   ;;  %s1117_s19 = sphi %s1181_s19, %s1501_s19   ;;  %s1113_s18 = sphi %s1179_s18, %s1500_s18  }
   0xe   : > { %1483 = sst [smem:[#allocation20_spill]] %s1133_s23  ;;  %s800_s25 = sadd.s32 4294967294, %s1133_s23  }
   0xf   : > { %s39_s26 = sadd.s32 1, %s1129_s22  ;;  %s48_s27 = sadd.s32 1, %s1121_s20 }
  0x10   : > { %p41_p0 = scmp.ge.s32.totalorder %s39_s26, 2  ;;  %p55_p1 = scmp.ne.s32.totalorder %s1121_s20, %s1117_s19 }
  0x11   : > { %p56_p2 = scmp.eq.s32.totalorder %s1133_s23, 0  ;;  %p61_p3 = scmp.ne.s32.totalorder %s1117_s19, %s1113_s18 }
  0x12   : > { %s1505_s26 = smov (%p41_p0, %s39_s26), 0  ;;  %p62_p5 = scmp.eq.s32.totalorder %s1210_s24, 0 }
  0x13   : > { %1484 = sst [smem:[#allocation21_spill]] %s1505_s26  ;;  %p1222_p4 = por %p56_p2, %p55_p1 }
  0x14   : > { %s43_s29 = ssub.s32 %s1129_s22, %s1505_s26  ;;  %p197_p6 = scmp.eq.s32.totalorder %s1210_s24, 1 }
  0x15   : > { %p46_p7 = scmp.eq.s32.totalorder %s43_s29, 0  ;;  %p1230_p8 = por %p62_p5, %p61_p3 }
  0x16   : > { %p1234_p9 = por %p197_p6, %p55_p1  ;;  %p203_p10 = scmp.eq.s32.totalorder %s800_s25, 1 }
  0x17   : > { %s1239_s7 = scalar_select %p46_p7, %s1121_s20, %s48_s27  }
  0x18   : > { %p1241_p11 = por %p203_p10, %p61_p3  ;;  %p866_p13 = scmp.lt.s32.totalorder %s1133_s23, 2 }
  0x19   : > { %1488 = sst [smem:[#allocation22_spill]] %s1239_s7  ;;  %s1248_s9 = sand.u32 1, %s1121_s20  }
  0x1a   : > { %s803_s10 = sshll.u32 %s1248_s9, 1  ;;  %s804_s11 = sshll.u32 %s1129_s22, 5 }
  0x1b   : > { %p1254_p0 = pnand %p866_p13, %p1222_p4  ;;  %s242_s13 = sand.u32 1, %s1133_s23  }
  0x1c   : > { %s1491_s1 = sld [smem:[#allocation24_spill]]  ;;  %s246_s17 = scalar_lea.vmem [#allocation9], %s803_s10 }
  0x1d   : > { %s254_s25 = sshll.u32 %s246_s17, 4  ;;  %s831_s29 = smul.u32 160, %s1129_s22  ;;  %s255_s25 = int_to_ptr.vmem [resolvable:$true] %s254_s25 }
  0x1e   : > { %s1266_s26 = scalar_lea.sflag [#allocation10], %s242_s13  ;;  %p935_p1 = pneg %p1254_p0 }
  0x1f   : > { %s946_s28 = scalar_lea.vmem %s255_s25, 32  ;;  %s1135_s7 = smov [#allocation9]  }
  0x20   : > { %p947_p2 = scmp.ne.s32.totalorder %s255_s25, %s946_s28  ;;  %s951_s20 = sshll.u32 %s1135_s7, 4  ;;  %s952_s20 = int_to_ptr.vmem [resolvable:$false] %s951_s20 }
  0x21   : > { %s953_s14 = scalar_lea.vmem %s952_s20, 64  ;;  %p954_p5 = scmp.lt.s32.totalorder %s255_s25, %s952_s20 }
  0x22   : > { %s252_s16 = scalar_lea.hbm %s1491_s1, %s804_s11  ;;  %p949_p3 = pnand %p947_p2, %p935_p1 }
  0x23   : > { %p955_p6 = scmp.lt.s32.totalorder %s953_s14, %s946_s28 }
  0x24   : > { %p950_p4 = pneg %p949_p3 }
  0x25   : > { %p956_p7 = por %p955_p6, %p954_p5 }
  0x27   : > { %p957_p10 = pnand %p956_p7, %p950_p4 }
  0x29   : > { %960 = shalt.err (!%p957_p10)
}
  0x2a   : > { %855 = dma.hbm_to_vmem [thread:$0]  (!%p1254_p0), %s252_s16, 32, %s255_s25, %s1266_s26  }
  0x2b   : > { %p809_p13 = scmp.ge.s32.totalorder %s1133_s23, 1  ;;  %p313_p2 = scmp.lt.s32.totalorder %s1133_s23, 3 }
  0x2c   : > { %s1493_s0 = sld [smem:[#allocation23_spill]]  ;;  %s227_s17 = scalar_lea.vmem [#allocation6], %s803_s10 }
  0x2d   : > { %p1278_p3 = pnand %p809_p13, %p313_p2  ;;  %s235_s28 = sshll.u32 %s227_s17, 4  ;;  %s236_s28 = int_to_ptr.vmem [resolvable:$true] %s235_s28 }
  0x2e   : > { %s1292_s1 = scalar_lea.hbm %s1472_s2, %s831_s29  ;;  %s224_s16 = scalar_lea.sflag [#allocation7], %s1248_s9 }
  0x2f   : > { %s974_s25 = scalar_lea.vmem %s236_s28, 32  ;;  %s1136_s23 = smov [#allocation6]  }
  0x30   : > { %p975_p4 = scmp.ne.s32.totalorder %s236_s28, %s974_s25  ;;  %s979_s20 = sshll.u32 %s1136_s23, 4  ;;  %s980_s20 = int_to_ptr.vmem [resolvable:$false] %s979_s20 }
  0x31   : > { %p982_p7 = scmp.lt.s32.totalorder %s236_s28, %s980_s20 }
  0x32   : > { %s233_s15 = scalar_lea.hbm %s1493_s0, %s804_s11  ;;  %p977_p5 = pnand %p975_p4, %p935_p1 }
  0x33   : > { %s981_s11 = scalar_lea.vmem %s980_s20, 64 }
  0x34   : > { %p978_p6 = pneg %p977_p5  ;;  %p983_p10 = scmp.lt.s32.totalorder %s981_s11, %s974_s25 }
  0x36   : > { %p984_p13 = por %p983_p10, %p982_p7 }
  0x38   : > { %p985_p2 = pnand %p984_p13, %p978_p6 }
  0x3a   : > { %988 = shalt.err (!%p985_p2)
}
  0x3b   : > { %852 = dma.hbm_to_vmem [thread:$0]  (!%p1254_p0), %s233_s15, 32, %s236_s28, %s224_s16  }
  0x3c   : > { %s1494_s10 = smul.u32 10, %s1248_s9  ;;  %s1137_s23 = smov [#allocation11]  }
  0x3d   : > { %s1007_s14 = sshll.u32 %s1137_s23, 4  ;;  %s1008_s14 = int_to_ptr.vmem [resolvable:$false] %s1007_s14 }
  0x3e   : > { %s265_s27 = scalar_lea.vmem [#allocation11], %s1494_s10  ;;  %s1009_s25 = scalar_lea.vmem %s1008_s14, 320 }
  0x3f   : > { %s273_s13 = sshll.u32 %s265_s27, 4  ;;  %s274_s13 = int_to_ptr.vmem [resolvable:$true] %s273_s13 }
  0x40   : > { %s1002_s17 = scalar_lea.vmem %s274_s13, 160  ;;  %p1010_p6 = scmp.lt.s32.totalorder %s274_s13, %s1008_s14 }
  0x41   : > { %p1003_p4 = scmp.ne.s32.totalorder %s274_s13, %s1002_s17  ;;  %p1011_p7 = scmp.lt.s32.totalorder %s1009_s25, %s1002_s17 }
  0x43   : > { %p1005_p5 = pnand %p1003_p4, %p935_p1  ;;  %p1012_p10 = por %p1011_p7, %p1010_p6 }
  0x45   : > { %p1006_p12 = pneg %p1005_p5 }
  0x47   : > { %p1013_p13 = pnand %p1012_p10, %p1006_p12 }
  0x49   : > { %1016 = shalt.err (!%p1013_p13)
}
  0x4a   : > { %s1138_s15 = smov 32   ;;  %s1139_s28 = smov 2  }
  0x4b   : > { %858 = dma.hbm_to_vmem [thread:$0]  (!%p1254_p0), %s1292_s1, 160, %s274_s13, %s1266_s26, %s1138_s15, %s1138_s15, %s1139_s28  }
  0x4c   : > { %s294_s11 = scalar_lea.hbm %s1473_s3, %s831_s29  ;;  %s287_s27 = scalar_lea.vmem [#allocation12], %s1494_s10 }
  0x4d   : > { %s295_s17 = sshll.u32 %s287_s27, 4  ;;  %s284_s23 = scalar_lea.sflag [#allocation13], %s1248_s9  ;;  %s296_s17 = int_to_ptr.vmem [resolvable:$true] %s295_s17 }
  0x4e   : > { %s1030_s14 = scalar_lea.vmem %s296_s17, 160  ;;  %s1140_s25 = smov [#allocation12]  }
  0x4f   : > { %p1031_p12 = scmp.ne.s32.totalorder %s296_s17, %s1030_s14  ;;  %s1035_s0 = sshll.u32 %s1140_s25, 4  ;;  %s1036_s0 = int_to_ptr.vmem [resolvable:$false] %s1035_s0 }
  0x50   : > { %s1037_s1 = scalar_lea.vmem %s1036_s0, 320  ;;  %p1038_p5 = scmp.lt.s32.totalorder %s296_s17, %s1036_s0 }
  0x51   : > { %p1033_p2 = pnand %p1031_p12, %p935_p1  ;;  %p1039_p6 = scmp.lt.s32.totalorder %s1037_s1, %s1030_s14 }
  0x53   : > { %p1034_p4 = pneg %p1033_p2  ;;  %p1040_p7 = por %p1039_p6, %p1038_p5 }
  0x55   : > { %p1041_p10 = pnand %p1040_p7, %p1034_p4 }
  0x57   : > { %1044 = shalt.err (!%p1041_p10)
}
  0x58   : > { %861 = dma.hbm_to_vmem [thread:$0]  (!%p1254_p0), %s294_s11, 160, %s296_s17, %s284_s23, %s1138_s15, %s1138_s15, %s1139_s28  }
  0x59   : > { %317 = sbr.rel (%p1278_p3) target bundleno = 240 (0xf0), region = 40  ;;  %s1325_s26 = sand.u32 (!%p1278_p3), 1, %s1117_s19  }
  0x5a   : > { %s810_s9 = sshll.u32 (!%p1278_p3), %s1325_s26, 1  ;;  %s320_s29 = scalar_lea.sflag (!%p1278_p3), [#allocation7], %s1325_s26 }
  0x5b   : > { %s323_s13 = scalar_lea.vmem (!%p1278_p3), [#allocation6], %s810_s9 }
  0x5e   : > { %1096 = dma.done.wait (%p1230_p8), %s320_s29, 32  }
  0x5f   : > { %1098 = vsyncadd (%p1230_p8), %s320_s29, 4294967264  ;;  %s328_s0 = sand.u32 1, %s1210_s24   ;;  %s332_s7 = scalar_lea.vmem [#allocation9], %s810_s9 }
  0x60   : > { %s329_s12 = scalar_lea.sflag [#allocation10], %s328_s0 }
  0x61   : > { %1100 = dma.done.wait (%p1230_p8), %s329_s12, 192  }
  0x62   : > { %1102 = vsyncadd (%p1230_p8), %s329_s12, 4294967104  ;;  %s834_s15 = smul.u32 10, %s1325_s26  ;;  %s347_s16 = scalar_lea.sflag [#allocation13], %s1325_s26 }
  0x64   : > { %s1339_s28 = scalar_lea.vmem [#allocation11], %s834_s15  ;;  %s1342_s20 = scalar_lea.vmem [#allocation12], %s834_s15 }
  0x65   : > { %1104 = dma.done.wait (%p1230_p8), %s347_s16, 160  }
  0x66   : > { %1106 = vsyncadd (%p1230_p8), %s347_s16, 4294967136  ;;  %p399_p0 = scmp.lt.s32.totalorder %s1125_s21, 1  ;;  %v1141_v0 = vmov 0.0   ;;  %v414_v1 = vld [vmem:[%s323_s13] sm:$0x3]  ;;  %vm584_vm0 = vcmask 1041408  }
  0x67   : > { %410 = vst [vmem:[#allocation2] sm:$0x3] %v1141_v0  ;;  %411 = vst [vmem:[#allocation3] sm:$0x3] %v1141_v0  ;;  %v415_v2 = vld [vmem:[%s332_s7] sm:$0x3] }
  0x68   : > { %412 = vst [vmem:[#allocation4] sm:$0x3] %v1141_v0  ;;  %413 = vst [vmem:[#allocation5] sm:$0x3] %v1141_v0  ;;  %s400_s24 = scalar_select %p399_p0, %s1125_s21, 1 }
  0x69   : > { %v817_v12 = vld [vmem:[%s1339_s28 + $0x8] sm:$0x3]  ;;  %v821_v14 = vld [vmem:[%s1342_s20 + $0x8] sm:$0x3]  ;;  %v1142_v45 = vmov 683565275  }
  0x6a   : > { %s813_s11 = sshll.u32 %s400_s24, 1  ;;  %v1359_v15 = vsub.f32 %v821_v14, %v817_v12  ;;  %v1143_v47 = vmov 2475754826   ;;  %v1144_v49 = vmov 2131351028   ;;  %s812_s30 = sshll.u32 %s1325_s26, 2 }
  0x6b   : > { %s405_s17 = scalar_lea.vmem %s1474_s4, %s813_s11  ;;  %v1145_v51 = vmov 2102212464   ;;  %v1146_v53 = vmov 920167782   ;;  %v1147_v60 = vmov 1326507024  }
  0x6c   : > { %v416_v3 = vld [vmem:[%s405_s17] sm:$0x3]  ;;  %v470_v16 = vand.u32 2147483647, %v1359_v15  ;;  %v473_v17 = vand.u32 2139095040, %v1359_v15  ;;  %s1404_s23 = scalar_lea.vmem [#allocation14], %s812_s30  ;;  %vm562_vm13 = vweird.f32 %v1359_v15 }
  0x6d   : > { %v1353_v4 = vmul.f32 %v416_v3, %v414_v1  ;;  %v426_v7 = vmul.f32 %v416_v3, %v415_v2  ;;  %v815_v3 = vld [vmem:[%s1339_s28 + $0x4] sm:$0x3]  ;;  %vm472_vm8 = vcmp.lt.s32.totalorder %v1359_v15, 0  ;;  %s634_s14 = sshll.u32 %s1404_s23, 4  ;;  %s827_s25 = sshll.u32 %s1125_s21, 6  ;;  %s1424_s14 = int_to_ptr.vmem [resolvable:$true] %s634_s14 }
  0x6e   : > { %v422_v5 = vld [vmem:[#allocation3] sm:$0x3]  ;;  %v418_v8 = vld [vmem:[#allocation2] sm:$0x3]  ;;  %v474_v18 = vshrl.u32 %v473_v17, 23  ;;  %s632_s29 = scalar_lea.hbm %s1475_s5, %s827_s25  ;;  %s621_s13 = scalar_lea.sflag [#allocation8], %s1325_s26 }
  0x6f   : > { %v425_v6 = vld [vmem:[#allocation4] sm:$0x3]  ;;  %v419_v9 = vmul.f32 %v1353_v4, %v415_v2  ;;  %v423_v10 = vadd.f32 %v422_v5, %v1353_v4  ;;  %v477_v19 = vand.u32 8388607, %v470_v16  ;;  %v429_v2 = vld [vmem:[%s1339_s28] sm:$0x3] }
  0x70   : > { %v427_v11 = vadd.f32 %v426_v7, %v425_v6  ;;  %v822_v22 = vadd.s32 4294967169, %v474_v18  ;;  %vm471_vm9 = vcmp.le.f32.partialorder %v470_v16, 0.7853982  ;;  %s1045_s0 = scalar_lea.vmem %s1424_s14, 64  ;;  %s1148_s12 = smov [#allocation14]  }
  0x71   : > { %v420_v13 = vadd.f32 %v419_v9, %v418_v8  ;;  %424 = vst [vmem:[#allocation3] sm:$0x3] %v423_v10  ;;  %v478_v30 = vor.u32 8388608, %v477_v19  ;;  %v814_v9 = vld [vmem:[%s1339_s28 + $0x2] sm:$0x3]  ;;  %p1046_p8 = scmp.ne.s32.totalorder %s1424_s14, %s1045_s0  ;;  %s1049_s21 = sshll.u32 %s1148_s12, 4  ;;  %s1050_s21 = int_to_ptr.vmem [resolvable:$false] %s1049_s21 }
  0x72   : > { %428 = vst [vmem:[#allocation4] sm:$0x3] %v427_v11  ;;  %v480_v28 = vadd.s32 1, %v822_v22  ;;  %v816_v10 = vld [vmem:[%s1339_s28 + $0x6] sm:$0x3]  ;;  %s1051_s7 = scalar_lea.vmem %s1050_s21, 128  ;;  %p1052_p13 = scmp.lt.s32.totalorder %s1424_s14, %s1050_s21 }
  0x73   : > { %421 = vst [vmem:[#allocation2] sm:$0x3] %v420_v13  ;;  %v1368_v40 = vshll.u32 %v478_v30, 8  ;;  %v819_v22 = vld [vmem:[%s1342_s20 + $0x4] sm:$0x3]  ;;  %p1047_p1 = pnand %p1046_p8, %p1234_p9  ;;  %p1053_p12 = scmp.lt.s32.totalorder %s1051_s7, %s1045_s0 }
  0x74   : > { %vm481_vm1 = vcmp.gt.s32.totalorder %v480_v28, 0 }
  0x75   : > { %v482_v34 = vsel %vm481_vm1, %v480_v28, 0  ;;  %v820_v28 = vld [vmem:[%s1342_s20 + $0x6] sm:$0x3]  ;;  %p1048_p3 = pneg %p1047_p1  ;;  %p1054_p2 = por %p1053_p12, %p1052_p13 }
  0x76   : > { %v483_v38 = vshrl.u32 %v482_v34, 5  ;;  %v484_v39 = vand.u32 31, %v482_v34 }
  0x77   : > { %p1055_p4 = pnand %p1054_p2, %p1048_p3 }
  0x78   : > { %v593_v20 = vld [vmem:[#allocation3] sm:$0x3]  ;;  %v485_v44 = vsub.s32 32, %v484_v39  ;;  %v487_v46 = vshll.u32 %v1142_v45, %v484_v39  ;;  %v490_v48 = vshll.u32 %v1143_v47, %v484_v39  ;;  %v493_v50 = vshll.u32 %v1144_v49, %v484_v39 }
  0x79   : > { %v602_v21 = vld [vmem:[#allocation4] sm:$0x3]  ;;  %v594_v23 = vsel %vm584_vm0, %v593_v20, 0.0  ;;  %v496_v52 = vshll.u32 %v1145_v51, %v484_v39  ;;  %v499_v54 = vshll.u32 %v1146_v53, %v484_v39  ;;  %vm502_vm2 = vcmp.lt.s32.totalorder %v483_v38, 1 }
  0x7a   : > { %v603_v24 = vsel %vm584_vm0, %v602_v21, 0.0  ;;  %v583_v25 = vld [vmem:[#allocation2] sm:$0x3]  ;;  %v595_v26 = vrot.slane %v594_v23, 4  ;;  %vm503_vm3 = vcmp.lt.s32.totalorder %v483_v38, 2  ;;  %v486_v55 = vshrl.u32 %v1142_v45, %v485_v44 }
  0x7b   : > { %v604_v27 = vrot.slane %v603_v24, 4  ;;  %v585_v29 = vsel %vm584_vm0, %v583_v25, 0.0  ;;  %v488_v56 = vshrl.u32 %v1143_v47, %v485_v44  ;;  %v491_v57 = vshrl.u32 %v1144_v49, %v485_v44  ;;  %v438_v21 = vld [vmem:[%s1342_s20] sm:$0x3] }
  0x7c   : > { %v586_v31 = vrot.slane %v585_v29, 4  ;;  %v596_v32 = vadd.f32 %v595_v26, %v594_v23  ;;  %v494_v58 = vshrl.u32 %v1145_v51, %v485_v44  ;;  %v497_v59 = vshrl.u32 %v1146_v53, %v485_v44 }
  0x7d   : > { %v605_v33 = vadd.f32 %v604_v27, %v603_v24  ;;  %v500_v61 = vshrl.u32 %v1147_v60, %v485_v44  ;;  %vm504_vm4 = vcmp.lt.s32.totalorder %v483_v38, 3  ;;  %vm505_vm5 = vcmp.lt.s32.totalorder %v483_v38, 4  ;;  %v818_v27 = vld [vmem:[%s1342_s20 + $0x2] sm:$0x3] }
  0x7e   : > { %v587_v35 = vadd.f32 %v586_v31, %v585_v29  ;;  %v597_v36 = vrot.slane %v596_v32, 2  ;;  %v489_v62 = vor.u32 %v488_v56, %v487_v46  ;;  %v492_v63 = vor.u32 %v491_v57, %v490_v48 }
  0x7f   : > { %v606_v37 = vrot.slane %v605_v33, 2  ;;  %v495_v0 = vor.u32 %v494_v58, %v493_v50  ;;  %v498_v5 = vor.u32 %v497_v59, %v496_v52  ;;  %v501_v6 = vor.u32 %v500_v61, %v499_v54 }
  0x80   : > { %v588_v41 = vrot.slane %v587_v35, 2  ;;  %v598_v42 = vadd.f32 %v597_v36, %v596_v32  ;;  %v506_v11 = vsel %vm502_vm2, %v486_v55, %v489_v62  ;;  %v510_v13 = vsel %vm502_vm2, %v489_v62, %v492_v63 }
  0x81   : > { %v1370_v43 = vadd.f32 %v606_v37, %v605_v33  ;;  %v507_v12 = vsel %vm505_vm5, %v495_v0, 2102212464  ;;  %v514_v14 = vsel %vm502_vm2, %v492_v63, %v495_v0  ;;  %v511_v18 = vsel %vm505_vm5, %v498_v5, 920167782 }
  0x82   : > { %v589_v1 = vadd.f32 %v588_v41, %v587_v35  ;;  %v599_v7 = vrot.slane %v598_v42, 1  ;;  %v508_v17 = vsel %vm504_vm4, %v492_v63, %v507_v12  ;;  %v515_v19 = vsel %vm505_vm5, %v501_v6, 1326507024 }
  0x83   : > { %v608_v8 = vrot.slane %v1370_v43, 1  ;;  %v447_v23 = vadd.f32 %v815_v3, %v429_v2  ;;  %v512_v24 = vsel %vm504_vm4, %v495_v0, %v511_v18  ;;  %v516_v25 = vsel %vm504_vm4, %v498_v5, %v515_v19 }
  0x84   : > { %v590_v20 = vrot.slane %v589_v1, 1  ;;  %v600_v26 = vadd.f32 %v599_v7, %v598_v42  ;;  %v448_v29 = vadd.f32 %v816_v10, %v814_v9  ;;  %v509_v30 = vsel %vm503_vm3, %v506_v11, %v508_v17 }
  0x85   : > { %v513_v31 = vsel %vm503_vm3, %v510_v13, %v512_v24  ;;  %v517_v32 = vsel %vm503_vm3, %v514_v14, %v516_v25  ;;  %v450_v37 = vadd.f32 %v819_v22, %v438_v21  ;;  %v456_v39 = vmin.f32 %v429_v2, %v438_v21 }
  0x86   : > { %v1395_v33 = vmul.u32.u64.low %v1368_v40, %v517_v32  ;;  %v1396_v34 = vmul.u32.u64.high %v1368_v40, %v517_v32, %v1395_v33  ;;  %v1399_v35 = vmul.u32.u64.low %v1368_v40, %v513_v31  ;;  %v1400_v36 = vmul.u32.u64.high %v1368_v40, %v513_v31, %v1399_v35  ;;  %601 = vst [vmem:[%s1404_s23 + $0x1] sm:$0x1] %v600_v26 }
  0x87   : > { %v591_v41 = vadd.f32 %v590_v20, %v589_v1  ;;  %v609_v38 = vadd.f32 %v608_v8, %v1370_v43  ;;  %v451_v42 = vadd.f32 %v820_v28, %v818_v27  ;;  %v453_v44 = vmin.f32 %v814_v9, %v818_v27 }
  0x88   : > { %v454_v45 = vmin.f32 %v816_v10, %v820_v28  ;;  %v457_v46 = vmin.f32 %v815_v3, %v819_v22  ;;  %v525_v47 = vmul.u32 %v1368_v40, %v509_v30  ;;  %vm527_vm6 = vc.u32 %v1396_v34, %v1399_v35 }
  0x89   : > { %592 = vst [vmem:[%s1404_s23] sm:$0x1] %v591_v41  ;;  %610 = vst [vmem:[%s1404_s23 + $0x2] sm:$0x1] %v609_v38  ;;  %v528_v48 = vadd.s32 1, %v1400_v36  ;;  %v449_v49 = vmul.f32 %v448_v29, %v447_v23  ;;  %v452_v50 = vmul.f32 %v451_v42, %v450_v37  ;;  %v526_v1 = vadd.s32 %v1399_v35, %v1396_v34  ;;  %v576_v38 = vld [vmem:[#allocation5] sm:$0x3] }
  0x8a   : > { %v455_v51 = vadd.f32 %v454_v45, %v453_v44  ;;  %v458_v52 = vadd.f32 %v457_v46, %v456_v39 }
  0x8b   : > { %v529_v53 = vsel %vm527_vm6, %v528_v48, %v1400_v36  ;;  %v460_v56 = vadd.f32 %v452_v50, %v449_v49 }
  0x8c   : > { %v530_v54 = vadd.s32 %v529_v53, %v525_v47  ;;  %v459_v55 = vmul.f32 %v458_v52, %v455_v51 }
  0x8e   : > { %v531_v43 = vadd.s32 536870912, %v530_v54  ;;  %v461_v59 = vsub.f32 %v460_v56, %v459_v55  ;;  %v462_v13 = vadd.f32 1.0, %v459_v55 }
  0x90   : > { %v532_v57 = vshrl.u32 %v531_v43, 30  ;;  %v463_v61 = vadd.f32 1.0, %v461_v59 }
  0x92   : > { %v533_v58 = vshll.u32 %v532_v57, 30  ;;  %925 = vrcp.f32 %v463_v61  ;;  %v556_v22 = vsub.s32 4, %v532_v57 }
  0x94   : > { %v534_v40 = vsub.s32 %v530_v54, %v533_v58  ;;  %v557_v24 = vsel %vm472_vm8, %v556_v22, %v532_v57 }
  0x95   : > { %v559_v25 = vsel %vm471_vm9, 0, %v557_v24 }
  0x96   : > { %v536_v60 = vsub.s32 0, %v534_v40  ;;  %v563_v26 = vand.u32 3, %v559_v25 }
  0x98   : > { %v823_v62 = vmin.u32 %v536_v60, %v534_v40  ;;  %vm568_vm10 = vcmp.eq.s32.totalorder %v563_v26, 2  ;;  %vm565_vm11 = vcmp.eq.s32.totalorder %v563_v26, 0  ;;  %vm564_vm12 = vcmp.lt.s32.totalorder %v563_v26, 2 }
  0x9a   : > { %v538_v63 = vclz %v823_v62 }
  0x9c   : > { %v824_v0 = vadd.s32 4294967294, %v538_v63 }
  0x9e   : > { %vm825_vm7 = vcmp.lt.s32.totalorder %v824_v0, 0 }
  0x9f   : > { %v541_v2 = vsel %vm825_vm7, 0, %v824_v0  ;;  %v926_v14 = vpop.eup %925 }
  0xa0   : > { %v542_v3 = vsub.s32 32, %v541_v2  ;;  %v543_v5 = vshll.u32 %v534_v40, %v541_v2  ;;  %v546_v6 = vsub.s32 4294967266, %v541_v2  ;;  %v465_v19 = vmul.f32 %v926_v14, %v462_v13 }
  0xa2   : > { %v544_v7 = vshrl.u32 %v526_v1, %v542_v3  ;;  %v547_v8 = vadd.s32 127, %v546_v6  ;;  %927 = vlog2.f32 %v465_v19 }
  0xa4   : > { %v545_v9 = vor.u32 %v544_v7, %v543_v5  ;;  %v548_v10 = vshll.u32 %v547_v8, 23 }
  0xa6   : > { %v549_v11 = vor.u32 4788187, %v548_v10  ;;  %v552_v12 = vcvt.s32.f32 %v545_v9 }
  0xa8   : > { %v550_v17 = vand.u32 2147483647, %v549_v11 }
  0xaa   : > { %v553_v18 = vmul.f32 %v552_v12, %v550_v17 }
  0xac   : > { %v554_v20 = vxor.u32 2147483648, %v553_v18 }
  0xae   : > { %v555_v21 = vsel %vm472_vm8, %v554_v20, %v553_v18 }
  0xaf   : > { %v558_v23 = vsel %vm471_vm9, %v1359_v15, %v555_v21  ;;  %v928_v27 = vpop.eup %927 }
  0xb0   : > { %929 = vcosq.f32 %v558_v23  ;;  %v467_v16 = vmul.f32 0.6931472, %v928_v27 }
  0xb1   : > { %931 = vsinq.f32 %v558_v23 }
  0xb2   : > { %v468_v36 = vsub.f32 0.0, %v467_v16 }
  0xbd   : > { %v930_v28 = vpop.eup %929 }
  0xbe   : > { %v932_v29 = vpop.eup %931  ;;  %v569_v30 = vxor.u32 2147483648, %v930_v28 }
  0xbf   : > { %v566_v31 = vxor.u32 2147483648, %v932_v29 }
  0xc0   : > { %v570_v32 = vsel %vm568_vm10, %v569_v30, %v932_v29 }
  0xc1   : > { %v567_v33 = vsel %vm565_vm11, %v930_v28, %v566_v31 }
  0xc2   : > { %v571_v34 = vsel %vm564_vm12, %v567_v33, %v570_v32 }
  0xc3   : > { %v572_v35 = vsel %vm562_vm13, nan, %v571_v34 }
  0xc4   : > { %v573_v37 = vsub.f32 1.0, %v572_v35 }
  0xc6   : > { %v574_v39 = vmul.f32 20.0, %v573_v37 }
  0xc8   : > { %v575_v41 = vadd.f32 %v574_v39, %v468_v36 }
  0xca   : > { %v577_v42 = vmul.f32 %v575_v41, %v1353_v4 }
  0xcc   : > { %v578_v44 = vadd.f32 %v577_v42, %v576_v38 }
  0xce   : > { %579 = vst [vmem:[#allocation5] sm:$0x3] %v578_v44 }
  0xd5   : > { %v611_v45 = vld [vmem:[#allocation5] sm:$0x3] }
  0xd6   : > { %v612_v15 = vsel %vm584_vm0, %v611_v45, 0.0 }
  0xd7   : > { %v613_v46 = vrot.slane %v612_v15, 4 }
  0xd9   : > { %v614_v47 = vadd.f32 %v613_v46, %v612_v15 }
  0xdb   : > { %v615_v48 = vrot.slane %v614_v47, 2 }
  0xdd   : > { %v616_v49 = vadd.f32 %v615_v48, %v614_v47 }
  0xdf   : > { %v617_v50 = vrot.slane %v616_v49, 1 }
  0xe1   : > { %v618_v4 = vadd.f32 %v617_v50, %v616_v49 }
  0xe3   : > { %619 = vst [vmem:[%s1404_s23 + $0x3] sm:$0x1] %v618_v4 }
  0xe4   : > { %1058 = shalt.err (!%p1055_p4)
}
  0xe5   : > { %s1059_s15 = scalar_lea.hbm %s632_s29, 64  ;;  %s1063_s16 = scalar_lea.hbm %s1475_s5, 128 }
  0xe6   : > { %p1060_p5 = scmp.ne.s32.totalorder %s632_s29, %s1059_s15  ;;  %p1064_p10 = scmp.lt.s32.totalorder %s632_s29, %s1475_s5 }
  0xe7   : > { %p1065_p0 = scmp.lt.s32.totalorder %s1063_s16, %s1059_s15 }
  0xe8   : > { %p1061_p6 = pnand %p1060_p5, %p1234_p9 }
  0xe9   : > { %p1066_p8 = por %p1065_p0, %p1064_p10 }
  0xea   : > { %p1062_p7 = pneg %p1061_p6 }
  0xec   : > { %p1067_p1 = pnand %p1066_p8, %p1062_p7 }
  0xee   : > { %1070 = shalt.err (!%p1067_p1)
}
  0xef   : > { %847 = dma.vmem_to_hbm [thread:$0]  (%p1234_p9), %s1424_s14, 64, %s632_s29, %s621_s13  }
  0xf0 PF: > { %s1495_s11 = sld [smem:[#allocation20_spill]]  ;;  %s646_s10 = sand.u32 1, %s1113_s18  }
  0xf1   : > { %s647_s27 = scalar_lea.sflag [#allocation8], %s646_s10 }
  0xf6   : > { %p1496_p3 = scmp.ge.s32.totalorder %s1495_s11, 2 }
  0xf8   : > { %p863_p13 = pnand %p1496_p3, %p1241_p11 }
  0xfa   : > { %p864_p12 = pneg %p863_p13 }
  0xfc   : > { %1108 = dma.done.wait (%p864_p12), %s647_s27, 64  }
  0xfd   : > { %1110 = vsyncadd (%p864_p12), %s647_s27, 4294967232  ;;  %s27_s23 = sadd.s32 1, %s1495_s11   ;;  %s1497_s17 = sld [smem:[#allocation19_spill]] }
  0xfe   : > { %p24_p2 = scmp.ge.s32.totalorder %s27_s23, 4   ;;  %s1498_s20 = sld [smem:[#allocation22_spill]] }
  0xff   : > { %s1499_s6 = sld [smem:[#allocation21_spill]]  ;;  %s1500_s18 = smov %s1117_s19 }
 0x100   : > { %s1502_s21 = smov %s1129_s22 }
 0x101   :  { %26 = sbr.rel (!%p24_p2) target bundleno = 13 (0xd), region = 141 }
 0x103   : > { %s1501_s19 = smov %s1497_s17 }
 0x105   : > { %s1503_s22 = smov %s1499_s6 }
 0x106   :  { %652 = vsyncpa [#allocation7], 1 }
 0x107   :  { %654 = vsyncpa [#allocation7 + $0x1], 1 }
 0x108   :  { %655 = vsyncpa [#allocation10], 1 }
 0x109   :  { %657 = vsyncpa [#allocation10 + $0x1], 1 }
 0x10a   :  { %658 = vsyncpa [#allocation13], 1 }
 0x10b   :  { %660 = vsyncpa [#allocation13 + $0x1], 1 }
 0x10c   :  { %661 = vsyncpa [#allocation8], 1 }
 0x10d   :  { %663 = vsyncpa [#allocation8 + $0x1], 1 }

</bundles_post_ra>
